<compile_context>
chip_gen: v5e
topology: v5e:2x2
jax: 0.10.0
libtpu: 0.0.40
codegen_flags: <defaults>
</compile_context>

<pallas_src>
import numpy as np
import jax
import jax.numpy as jnp
from jax.experimental import pallas as pl
from jax.experimental.pallas import tpu as pltpu

NEG_SLOPE = 0.2
BN_EPS = 1e-5


def _leaky(x):
    return jnp.where(x >= 0, x, NEG_SLOPE * x)


def _gather_neighbours(points, idx):
    """points (B,N,C), idx (B,N,K) int32 -> (B,N,K,C). Matches torch.gather dim=1."""
    B, N, C = points.shape
    K = idx.shape[-1]
    flat = idx.reshape(B, N * K)
    g = jnp.take_along_axis(points, flat[:, :, None], axis=1)
    return g.reshape(B, N, K, C)


def _init_conv_bn(key, c_in, c_out):
    """Conv2d(1x1, bias=False) + BatchNorm2d (eval mode), folded to (W^T, bias)."""
    kw, kg, kb, km, kv = jax.random.split(key, 5)
    w = jax.random.normal(kw, (c_out, c_in), jnp.float32) / jnp.sqrt(c_in)
    gamma = 1.0 + 0.1 * jax.random.normal(kg, (c_out,), jnp.float32)
    beta = 0.1 * jax.random.normal(kb, (c_out,), jnp.float32)
    mean = 0.1 * jax.random.normal(km, (c_out,), jnp.float32)
    var = jnp.abs(jax.random.normal(kv, (c_out,), jnp.float32)) + 0.5
    scale = gamma / jnp.sqrt(var + BN_EPS)
    shift = beta - mean * scale
    return (w * scale[:, None]).T, shift.reshape(1, c_out)


def _init_fc(key, c_in, c_out):
    w = jax.random.normal(key, (c_out, c_in), jnp.float32) / jnp.sqrt(c_in)
    return w.T


def init_params(key, d_in, d_out):
    d4 = d_out // 2
    ks = jax.random.split(key, 9)
    p = {}
    p["mlp1"] = _init_conv_bn(ks[0], d_in, d4)             # LFA.mlp1 (leaky)
    p["shortcut"] = _init_conv_bn(ks[1], d_in, 2 * d_out)  # no activation
    p["lse_mlp1"] = _init_conv_bn(ks[2], 10, d4)           # leaky
    p["lse_mlp2"] = _init_conv_bn(ks[3], d4, d4)           # leaky
    p["pool1_fc"] = _init_fc(ks[4], d_out, d_out)          # no bias / bn
    p["pool1_mlp"] = _init_conv_bn(ks[5], d_out, d4)       # leaky
    p["pool2_fc"] = _init_fc(ks[6], d_out, d_out)
    p["pool2_mlp"] = _init_conv_bn(ks[7], d_out, d_out)    # leaky
    p["mlp2"] = _init_conv_bn(ks[8], d_out, 2 * d_out)     # no activation
    return p


def _choose_tile_n(N, K, d4, budget_bytes=4 << 20):
    """Largest N-tile (multiple of 8, dividing N) whose per-step working set
    (double-buffered I/O blocks + softmax temps, f32) fits a conservative
    budget that is safe on v5e/v6e (128 MiB VMEM) and v7x (64 MiB VMEM)."""
    d_out = 2 * d4
    per_row = 4 * (2 * (K * (3 + d4) + 3 + 4 * d_out) + K * (2 * d4 + 3 * d_out))
    tn = min(N, max(8, budget_bytes // max(per_row, 1)))
    tn -= tn % 8
    while tn > 8 and N % tn:
        tn -= 8
    return tn if tn >= 8 and N % tn == 0 else N


def local_feature_aggregation(feature, xyz, neigh_idx, params):
    B, N, d_in = feature.shape
    K = neigh_idx.shape[-1]
    d4 = params["mlp1"][0].shape[1]
    d_out = 2 * d4
    d2 = 2 * d_out

    TN = _choose_tile_n(N, K, d4)
    grid = (B, N // TN)

    def tspec(*trailing):                      # data block (1, TN, *trailing)
        nd = len(trailing)
        return pl.BlockSpec((1, TN) + trailing,
                            lambda b, n, _nd=nd: (b, n) + (0,) * _nd)

    def wspec(arr):                            # weight replicated across grid
        nd = arr.ndim
        return pl.BlockSpec(arr.shape, lambda b, n, _nd=nd: (0,) * _nd)

    cp = pltpu.CompilerParams(dimension_semantics=("parallel", "parallel"))

    # ---- fold / split weights once on the host side (free) ----
    w1, b1 = params["mlp1"]
    ws, bs = params["shortcut"]
    wcat = jnp.concatenate([w1, ws], axis=1)          # (d_in, d4 + d2)
    bcat = jnp.concatenate([b1, bs], axis=1)          # (1, d4 + d2)

    wl1, bl1 = params["lse_mlp1"]                     # (10, d4), (1, d4)
    wl2, bl2 = params["lse_mlp2"]                     # (d4, d4), (1, d4)
    wfc1 = params["pool1_fc"]                         # (d_out, d_out)
    wp1, bp1 = params["pool1_mlp"]                    # (d_out, d4), (1, d4)
    wfc2 = params["pool2_fc"]                         # (d_out, d_out)
    wp2, bp2 = params["pool2_mlp"]                    # (d_out, d_out), (1, d_out)
    wm2, bm2 = params["mlp2"]                         # (d_out, d2), (1, d2)

    # split fc / mlp weights by input block: rows [:d4] act on f_neigh,
    # rows [d4:] act on f_coords (concat order [f_neigh, f_coords]).
    wfc1_a, wfc1_b = wfc1[:d4], wfc1[d4:]
    wp1_a, wp1_b = wp1[:d4], wp1[d4:]
    wfc2_a, wfc2_b = wfc2[:d4], wfc2[d4:]
    wp2_a, wp2_b = wp2[:d4], wp2[d4:]

    # ---------------- in-kernel helpers (no channel concats) ----------------
    def _pe_mlp1(xyz_b, nc, wl1_v, bl1_v):
        """Position encoding + LSE.mlp1 with split per-term weights.
        xyz_b (TN,3), nc (TN,K,3), wl1_v (10,d4), bl1_v (1,d4) -> (TN,K,d4)."""
        rel = xyz_b[:, None, :] - nc                                   # (TN,K,3)
        dist = jnp.sqrt(jnp.sum(rel * rel, axis=-1, keepdims=True))    # (TN,K,1)
        h = dist * wl1_v[0:1, :]                                       # (TN,K,d4)
        for c in range(3):
            h = h + rel[..., c:c + 1] * wl1_v[1 + c:2 + c, :]
            h = h + nc[..., c:c + 1] * wl1_v[7 + c:8 + c, :]
        # xyz ("tile") term: computed once per point, broadcast over K.
        pt = (xyz_b[:, 0:1] * wl1_v[4:5, :]
              + xyz_b[:, 1:2] * wl1_v[5:6, :]
              + xyz_b[:, 2:3] * wl1_v[6:7, :])                         # (TN,d4)
        return _leaky(h + pt[:, None, :] + bl1_v)

    def _att_pool(f_a, f_b, wfc_a, wfc_b, wp_a, wp_b, bp):
        """AttentivePooling with split matmuls. f_a/f_b (TN,K,d4)."""
        dm = wfc_a.shape[1]                                            # = d_out
        act = (jnp.dot(f_a.reshape(TN * K, d4), wfc_a,
                       preferred_element_type=jnp.float32)
               + jnp.dot(f_b.reshape(TN * K, d4), wfc_b,
                         preferred_element_type=jnp.float32)).reshape(TN, K, dm)
        act = act - jnp.max(act, axis=1, keepdims=True)
        e = jnp.exp(act)
        inv = pl.reciprocal(jnp.sum(e, axis=1, keepdims=True), approx=True)
        scores = e * inv
        agg_a = jnp.sum(f_a * scores[..., :d4], axis=1)                # (TN, d4)
        agg_b = jnp.sum(f_b * scores[..., d4:], axis=1)                # (TN, d4)
        return _leaky(jnp.dot(agg_a, wp_a, preferred_element_type=jnp.float32)
                      + jnp.dot(agg_b, wp_b, preferred_element_type=jnp.float32)
                      + bp)

    # -------- Stage A: fused LFA.mlp1 + shortcut (one MXU pass over x) --------
    def kernel_a(feat_ref, w_ref, b_ref, fpc_ref, sc_ref):
        x = feat_ref[0]                                                # (TN, d_in)
        y = jnp.dot(x, w_ref[...], preferred_element_type=jnp.float32) + b_ref[...]
        fpc_ref[0] = _leaky(y[:, :d4])
        sc_ref[0] = y[:, d4:]

    f_pc, shortcut = pl.pallas_call(
        kernel_a, grid=grid,
        in_specs=[tspec(d_in), wspec(wcat), wspec(bcat)],
        out_specs=(tspec(d4), tspec(d2)),
        out_shape=(jax.ShapeDtypeStruct((B, N, d4), jnp.float32),
                   jax.ShapeDtypeStruct((B, N, d2), jnp.float32)),
        compiler_params=cp,
    )(feature, wcat, bcat)

    # TODO(synk): data-dependent neighbour gathers kept in JAX glue.
    n_coords = _gather_neighbours(xyz, neigh_idx)       # (B, N, K, 3)
    f_neigh1 = _gather_neighbours(f_pc, neigh_idx)      # (B, N, K, d4)

    # -------- Stage B: position encoding + LSE.mlp1 + attentive pool 1 --------
    def kernel_b(xyz_ref, nc_ref, fn_ref, wl1_ref, bl1_ref,
                 wfca_ref, wfcb_ref, wpa_ref, wpb_ref, bp_ref, pool_ref):
        f_coords = _pe_mlp1(xyz_ref[0], nc_ref[0], wl1_ref[...], bl1_ref[...])
        pool_ref[0] = _att_pool(fn_ref[0], f_coords,
                                wfca_ref[...], wfcb_ref[...],
                                wpa_ref[...], wpb_ref[...], bp_ref[...])

    pool1_out = pl.pallas_call(
        kernel_b, grid=grid,
        in_specs=[tspec(3), tspec(K, 3), tspec(K, d4),
                  wspec(wl1), wspec(bl1), wspec(wfc1_a), wspec(wfc1_b),
                  wspec(wp1_a), wspec(wp1_b), wspec(bp1)],
        out_specs=tspec(d4),
        out_shape=jax.ShapeDtypeStruct((B, N, d4), jnp.float32),
        compiler_params=cp,
    )(xyz, n_coords, f_neigh1, wl1, bl1, wfc1_a, wfc1_b, wp1_a, wp1_b, bp1)

    f_neigh2 = _gather_neighbours(pool1_out, neigh_idx)  # (B, N, K, d4)

    # -------- Stage C: recompute f_coords (cheaper than an HBM round trip),
    #          LSE.mlp2, attentive pool 2, LFA.mlp2, residual add + leaky --------
    def kernel_c(xyz_ref, nc_ref, fn2_ref, sc_ref, wl1_ref, bl1_ref,
                 wl2_ref, bl2_ref, wfca_ref, wfcb_ref, wpa_ref, wpb_ref,
                 bp_ref, wm2_ref, bm2_ref, out_ref):
        f_coords = _pe_mlp1(xyz_ref[0], nc_ref[0], wl1_ref[...], bl1_ref[...])
        f_coords = _leaky(
            jnp.dot(f_coords.reshape(TN * K, d4), wl2_ref[...],
                    preferred_element_type=jnp.float32) + bl2_ref[...]
        ).reshape(TN, K, d4)
        pooled = _att_pool(fn2_ref[0], f_coords,
                           wfca_ref[...], wfcb_ref[...],
                           wpa_ref[...], wpb_ref[...], bp_ref[...])    # (TN, d_out)
        y = jnp.dot(pooled, wm2_ref[...],
                    preferred_element_type=jnp.float32) + bm2_ref[...]
        out_ref[0] = _leaky(y + sc_ref[0])

    out = pl.pallas_call(
        kernel_c, grid=grid,
        in_specs=[tspec(3), tspec(K, 3), tspec(K, d4), tspec(d2),
                  wspec(wl1), wspec(bl1), wspec(wl2), wspec(bl2),
                  wspec(wfc2_a), wspec(wfc2_b), wspec(wp2_a), wspec(wp2_b),
                  wspec(bp2), wspec(wm2), wspec(bm2)],
        out_specs=tspec(d2),
        out_shape=jax.ShapeDtypeStruct((B, N, d2), jnp.float32),
        compiler_params=cp,
    )(xyz, n_coords, f_neigh2, shortcut, wl1, bl1, wl2, bl2,
      wfc2_a, wfc2_b, wp2_a, wp2_b, bp2, wm2, bm2)
    return out


def reference(feature, xyz, neigh_idx, params):
    """Pure-JAX reference with identical (channels-last) semantics."""
    def conv(x, wb, act):
        w, b = wb
        y = x @ w + b
        return _leaky(y) if act else y

    def att_pool(f, wfc, wbmlp):
        scores = jax.nn.softmax(f @ wfc, axis=2)
        agg = jnp.sum(f * scores, axis=2)
        return conv(agg, wbmlp, True)

    f_pc = conv(feature, params["mlp1"], True)
    shortcut = conv(feature, params["shortcut"], False)
    nc = _gather_neighbours(xyz, neigh_idx)
    tile = jnp.broadcast_to(xyz[:, :, None, :], nc.shape)
    rel = tile - nc
    dist = jnp.sqrt(jnp.sum(rel ** 2, -1, keepdims=True))
    pe = jnp.concatenate([dist, rel, tile, nc], -1)
    f_coords = conv(pe, params["lse_mlp1"], True)
    f_neigh = _gather_neighbours(f_pc, neigh_idx)
    f_concat = jnp.concatenate([f_neigh, f_coords], -1)
    p1 = att_pool(f_concat, params["pool1_fc"], params["pool1_mlp"])
    f_coords = conv(f_coords, params["lse_mlp2"], True)
    f_neigh = _gather_neighbours(p1, neigh_idx)
    f_concat = jnp.concatenate([f_neigh, f_coords], -1)
    p2 = att_pool(f_concat, params["pool2_fc"], params["pool2_mlp"])
    y = conv(p2, params["mlp2"], False)
    return _leaky(y + shortcut)


if __name__ == "__main__":
    B, N, K = 2, 16, 8
    d_in, d_out = 8, 16
    key = jax.random.PRNGKey(0)
    k1, k2, k3, kp = jax.random.split(key, 4)
    # feature (B, N, d_in) channels-last  == PyTorch (B, d_in, N, 1)
    feature = jax.random.normal(k1, (B, N, d_in), jnp.float32)
    xyz = jax.random.uniform(k2, (B, N, 3), jnp.float32)
    neigh_idx = jax.random.randint(k3, (B, N, K), 0, N, dtype=jnp.int32)
    params = init_params(kp, d_in, d_out)

    out = jax.block_until_ready(
        local_feature_aggregation(feature, xyz, neigh_idx, params))
    ref = jax.block_until_ready(reference(feature, xyz, neigh_idx, params))

    assert out.shape == (B, N, 2 * d_out)
    np.testing.assert_allclose(np.asarray(out), np.asarray(ref),
                               rtol=1e-2, atol=1e-2)
    print("KERNEL_OK")
</pallas_src>

<mosaic_0001>
module attributes {stable_mosaic.version = 11 : i64} {
  func.func @kernel_a(%arg0: i32, %arg1: i32, %arg2: memref<1x16x8xf32, #tpu.memory_space<vmem>>, %arg3: memref<8x40xf32, #tpu.memory_space<vmem>>, %arg4: memref<1x40xf32, #tpu.memory_space<vmem>>, %arg5: memref<1x16x8xf32, #tpu.memory_space<vmem>>, %arg6: memref<1x16x32xf32, #tpu.memory_space<vmem>>) attributes {dimension_semantics = [#tpu.dimension_semantics<parallel>, #tpu.dimension_semantics<parallel>], iteration_bounds = array<i64: 2, 1>, scalar_prefetch = 0 : i64, scratch_operands = 0 : i64, tpu.core_type = #tpu.core_type<tc>, window_params = [{transform_indices = @transform_0, window_bounds = array<i64: 1, 16, 8>}, {pipeline_mode = #tpu.pipeline_mode<synchronous>, transform_indices = @transform_1, window_bounds = array<i64: 8, 40>}, {pipeline_mode = #tpu.pipeline_mode<synchronous>, transform_indices = @transform_2, window_bounds = array<i64: 1, 40>}, {transform_indices = @transform_3, window_bounds = array<i64: 1, 16, 8>}, {transform_indices = @transform_4, window_bounds = array<i64: 1, 16, 32>}]} {
    %c0 = arith.constant 0 : index
    %c0_0 = arith.constant 0 : index
    %c0_1 = arith.constant 0 : index
    %0 = vector.load %arg2[%c0, %c0_0, %c0_1] : memref<1x16x8xf32, #tpu.memory_space<vmem>>, vector<1x16x8xf32>
    %1 = vector.shape_cast %0 : vector<1x16x8xf32> to vector<16x8xf32>
    %c0_2 = arith.constant 0 : index
    %c0_3 = arith.constant 0 : index
    %2 = vector.load %arg3[%c0_2, %c0_3] : memref<8x40xf32, #tpu.memory_space<vmem>>, vector<8x40xf32>
    %cst = arith.constant dense<0.000000e+00> : vector<16x40xf32>
    %3 = tpu.matmul %1, %2, %cst {dimension_numbers = #tpu.dot_dimension_numbers<[1], [0], [0], [1], [0, 0, 1, 1], [], []>} : vector<16x8xf32>, vector<8x40xf32>, vector<16x40xf32> -> vector<16x40xf32>
    %c0_4 = arith.constant 0 : index
    %c0_5 = arith.constant 0 : index
    %4 = vector.load %arg4[%c0_4, %c0_5] : memref<1x40xf32, #tpu.memory_space<vmem>>, vector<1x40xf32>
    %5 = vector.broadcast %4 : vector<1x40xf32> to vector<16x40xf32>
    %6 = arith.addf %3, %5 : vector<16x40xf32>
    %7 = vector.extract_strided_slice %6 {offsets = [0, 0], sizes = [16, 8], strides = [1, 1]} : vector<16x40xf32> to vector<16x8xf32>
    %cst_6 = arith.constant 0.000000e+00 : f32
    %8 = vector.broadcast %cst_6 : f32 to vector<16x8xf32>
    %9 = arith.cmpf oge, %7, %8 : vector<16x8xf32>
    %cst_7 = arith.constant 2.000000e-01 : f32
    %10 = vector.broadcast %cst_7 : f32 to vector<16x8xf32>
    %11 = arith.mulf %10, %7 : vector<16x8xf32>
    %12 = arith.select %9, %7, %11 : vector<16x8xi1>, vector<16x8xf32>
    %c0_8 = arith.constant 0 : index
    %c0_9 = arith.constant 0 : index
    %c0_10 = arith.constant 0 : index
    %13 = vector.load %arg5[%c0_8, %c0_9, %c0_10] : memref<1x16x8xf32, #tpu.memory_space<vmem>>, vector<1x16x8xf32>
    %14 = vector.shape_cast %13 : vector<1x16x8xf32> to vector<16x8xf32>
    %15 = vector.shape_cast %12 : vector<16x8xf32> to vector<1x16x8xf32>
    tpu.vector_store %arg5[%c0_8, %c0_9, %c0_10], %15 {strides = array<i32>} : memref<1x16x8xf32, #tpu.memory_space<vmem>>, vector<1x16x8xf32>,
    %16 = vector.extract_strided_slice %6 {offsets = [0, 8], sizes = [16, 32], strides = [1, 1]} : vector<16x40xf32> to vector<16x32xf32>
    %c0_11 = arith.constant 0 : index
    %c0_12 = arith.constant 0 : index
    %c0_13 = arith.constant 0 : index
    %17 = vector.load %arg6[%c0_11, %c0_12, %c0_13] : memref<1x16x32xf32, #tpu.memory_space<vmem>>, vector<1x16x32xf32>
    %18 = vector.shape_cast %17 : vector<1x16x32xf32> to vector<16x32xf32>
    %19 = vector.shape_cast %16 : vector<16x32xf32> to vector<1x16x32xf32>
    tpu.vector_store %arg6[%c0_11, %c0_12, %c0_13], %19 {strides = array<i32>} : memref<1x16x32xf32, #tpu.memory_space<vmem>>, vector<1x16x32xf32>,
    return
  }
  func.func @transform_0(%arg0: i32, %arg1: i32) -> (i32, i32, i32) {
    %c0_i32 = arith.constant 0 : i32
    %c0_i32_0 = arith.constant 0 : i32
    return %arg0, %arg1, %c0_i32 : i32, i32, i32
  }
  func.func @transform_1(%arg0: i32, %arg1: i32) -> (i32, i32) {
    %c0_i32 = arith.constant 0 : i32
    %c0_i32_0 = arith.constant 0 : i32
    %c0_i32_1 = arith.constant 0 : i32
    return %c0_i32, %c0_i32_0 : i32, i32
  }
  func.func @transform_2(%arg0: i32, %arg1: i32) -> (i32, i32) {
    %c0_i32 = arith.constant 0 : i32
    %c0_i32_0 = arith.constant 0 : i32
    %c0_i32_1 = arith.constant 0 : i32
    return %c0_i32, %c0_i32_0 : i32, i32
  }
  func.func @transform_3(%arg0: i32, %arg1: i32) -> (i32, i32, i32) {
    %c0_i32 = arith.constant 0 : i32
    %c0_i32_0 = arith.constant 0 : i32
    return %arg0, %arg1, %c0_i32 : i32, i32, i32
  }
  func.func @transform_4(%arg0: i32, %arg1: i32) -> (i32, i32, i32) {
    %c0_i32 = arith.constant 0 : i32
    %c0_i32_0 = arith.constant 0 : i32
    return %arg0, %arg1, %c0_i32 : i32, i32, i32
  }
}

</mosaic_0001>

<bundles_post_ra>
// kernel: tpu_custom_call.1
= control target key start
LH: loop header
LB: loop body
LE: loop exit
PB: predicated region body
PF: predicated region fallthrough
CT: control target
= control target key end

     0   :  { %10 = vsyncpa [#allocation3], 0  ;;  %s752_s0 = inlined_call_operand.vmem [shape: f32[2,16,8], index: 0, kind: input, shape index: {}]   ;;  %s753_s1 = inlined_call_operand.vmem [shape: f32[8,40], index: 1, kind: input, shape index: {}]   ;;  %s754_s2 = inlined_call_operand.vmem [shape: f32[1,40], index: 2, kind: input, shape index: {}]   ;;  %s755_s3 = inlined_call_operand.vmem [shape: f32[2,16,8], index: 3, kind: output, shape index: {0}]   ;;  %s756_s4 = inlined_call_operand.hbm [shape: f32[2,16,32], index: 4, kind: output, shape index: {1}]  }
   0x1   :  { %12 = vsyncpa [#allocation3 + $0x1], 0  ;;  %s642_s15 = smov 0   ;;  %s644_s16 = smov 0  }
   0x2   :  { %s646_s17 = smov 0   ;;  %s648_s18 = smov 0  }
   0x3   :  { %s650_s19 = smov 0   ;;  %s652_s20 = smov 0  }
   0x4 LB: > { %s454_s21 = sadd.s32 4294967295, %s612_s20   ;;  %s455_s22 = sadd.s32 4294967294, %s612_s20   ;;  %s612_s20 = sphi %s652_s20, %s18_s20   ;;  %s608_s19 = sphi %s650_s19, %s763_s19   ;;  %s604_s18 = sphi %s648_s18, %s762_s18   ;;  %s600_s17 = sphi %s646_s17, %s761_s17   ;;  %s596_s16 = sphi %s644_s16, %s760_s16   ;;  %s592_s15 = sphi %s642_s15, %s759_s15  }
   0x5   : > { %s30_s23 = sadd.s32 1, %s608_s19  ;;  %s137_s24 = sadd.s32 1, %s600_s17 }
   0x6   : > { %p32_p0 = scmp.ge.s32.totalorder %s30_s23, 2  ;;  %p147_p1 = scmp.ne.s32.totalorder %s600_s17, %s596_s16 }
   0x7   : > { %p148_p2 = scmp.eq.s32.totalorder %s454_s21, 1  ;;  %p153_p3 = scmp.ne.s32.totalorder %s596_s16, %s592_s15 }
   0x8   : > { %s765_s23 = smov (%p32_p0, %s30_s23), 0  ;;  %p154_p5 = scmp.eq.s32.totalorder %s455_s22, 1 }
   0x9   : > { %p682_p4 = por %p148_p2, %p147_p1  ;;  %s132_s26 = ssub.s32 %s608_s19, %s765_s23 }
   0xa   : > { %p458_p6 = scmp.ge.s32.totalorder %s612_s20, 1  ;;  %p135_p7 = scmp.eq.s32.totalorder %s132_s26, 0 }
   0xb   : > { %p689_p8 = por %p154_p5, %p153_p3  ;;  %p191_p9 = scmp.lt.s32.totalorder %s612_s20, 3 }
   0xc   : > { %s695_s28 = scalar_select %p135_p7, %s600_s17, %s137_s24  }
   0xd   : > { %p192_p10 = pnand %p458_p6, %p191_p9 }
   0xe   : > { %p231_p11 = scmp.lt.s32.totalorder (!%p192_p10), %s604_s18, 1  ;;  %s614_s21 = smov (!%p192_p10), 120  }
   0xf   : > { %195 = sbr.rel (%p192_p10) target bundleno = 280 (0x118), region = 32  ;;  %s227_s22 = sand.u32 (!%p192_p10), 1, %s596_s16  }
  0x10   : > { %s459_s24 = sshll.u32 (!%p192_p10), %s227_s22, 4  ;;  %s473_s26 = sshll.u32 (!%p192_p10), %s604_s18, 4 }
  0x11   : > { %s554_s13 = scalar_lea.hbm (!%p192_p10), %s756_s4, 32 }
  0x14   : > { %v253_v0 = vld [vmem:[%s753_s1] sm:$0xff]  ;;  %s232_s5 = scalar_select %p231_p11, %s604_s18, 1  ;;  %vm258_vm0 = vcmask 64512   ;;  %vm304_vm3 = vcmask 261120  }
  0x15   : > { %280 = vmatpush.msra.mxu0 %v253_v0  ;;  %474 = vmatpush.msra.mxu1 %v253_v0  ;;  %v533_v3 = vld [vmem:[%s754_s2] ss:$0 sm:$0xff] }
  0x16   : > { %s471_s6 = sshll.u32 %s232_s5, 4  ;;  %s334_s5 = scalar_lea.hbm %s756_s4, %s473_s26 }
  0x17   : > { %s238_s9 = scalar_lea.vmem %s752_s0, %s471_s6  ;;  %s248_s14 = scalar_lea.vmem %s755_s3, %s471_s6 }
  0x18   : > { %v251_v1 = vld [vmem:[%s238_s9] sm:$0xff]  ;;  %v252_v2 = vld [vmem:[%s238_s9 + $0x8] sm:$0xff]  ;;  %s229_s6 = scalar_lea.vmem [#allocation2], %s459_s24  ;;  %s337_s8 = sshll.u32 %s334_s5, 4  ;;  %s338_s8 = int_to_ptr.hbm [resolvable:$true] %s337_s8 }
  0x19   : > { %464 = vmatmul.msk.f32.vlgmr.msra.gmra.mxu0 %vm258_vm0, %v251_v1  ;;  %465 = vmatmul.msk.f32.vlgmr.msra.gmra.mxu1 %vm258_vm0, %v252_v2  ;;  %s335_s7 = sshll.u32 %s229_s6, 4  ;;  %s317_s9 = scalar_lea.sflag [#allocation3], %s227_s22  ;;  %s336_s7 = int_to_ptr.vmem [resolvable:$true] %s335_s7 }
  0x1a   : > { %s548_s10 = sshra.s32 %s338_s8, 4  ;;  %s549_s10 = int_to_ptr.hbm [resolvable:$true] %s548_s10 }
  0x1b   : > { %s550_s11 = scalar_lea.hbm %s549_s10, 16  ;;  %p555_p1 = scmp.lt.s32.totalorder %s549_s10, %s756_s4 }
  0x1c   : > { %p551_p12 = scmp.ne.s32.totalorder %s549_s10, %s550_s11  ;;  %p556_p2 = scmp.lt.s32.totalorder %s554_s13, %s550_s11 }
  0x1e   : > { %p552_p13 = pnand %p551_p12, %p682_p4  ;;  %p557_p3 = por %p556_p2, %p555_p1 }
  0x20   : > { %p553_p0 = pneg %p552_p13 }
  0x22   : > { %p558_p5 = pnand %p557_p3, %p553_p0 }
  0x96   : > { %v282_v4 = vpop.f32.mrf.mxu0  ;;  %v285_v5 = vpop.f32.mrf.mxu1 }
  0x97   : > { %v283_v6 = vadd.f32 %v533_v3, %v282_v4  ;;  %v286_v7 = vadd.f32 %v533_v3, %v285_v5 }
  0x99   : > { %vm288_vm1 = vcmp.ge.f32.partialorder %v283_v6, 0.0  ;;  %v290_v8 = vmul.f32 0.2, %v283_v6  ;;  %298 = vrot.lane.b32.xlu0 %v283_v6, %s614_s21  ;;  %vm289_vm2 = vcmp.ge.f32.partialorder %v286_v7, 0.0  ;;  %v291_v9 = vmul.f32 0.2, %v286_v7 }
  0x9b   : > { %v292_v10 = vsel %vm288_vm1, %v283_v6, %v290_v8  ;;  %v293_v11 = vsel %vm289_vm2, %v286_v7, %v291_v9 }
  0x9c   : > { %294 = vst.msk [vmem:[%s248_s14] sm:$0xff] %vm258_vm0, %v292_v10 }
  0x9d   : > { %295 = vst.msk [vmem:[%s248_s14 + $0x8] sm:$0xff] %vm258_vm0, %v293_v11 }
  0xa1   : > { %300 = vrot.lane.b32.xlu0 %v286_v7, %s614_s21 }
 0x10b   : > { %v299_v12 = vpop.permute.xlu0 %298 }
 0x10c   : > { %305 = vst.msk [vmem:[%s229_s6] sm:$0xff] %vm304_vm3, %v299_v12 }
 0x113   : > { %v301_v13 = vpop.permute.xlu0 %300 }
 0x114   : > { %306 = vst.msk [vmem:[%s229_s6 + $0x8] sm:$0xff] %vm304_vm3, %v301_v13 }
 0x115   : > { %561 = shalt.err (!%p558_p5)
}
 0x116   : > { %s615_s22 = smov 128   ;;  %s616_s24 = smov 8  }
 0x117   : > { %475 = dma.vmem_to_hbm [thread:$0]  (%p682_p4), %s336_s7, 256, %s338_s8, %s317_s9, %s615_s22, %s615_s22, %s616_s24  }
 0x118 PF: > { %p481_p6 = scmp.ge.s32.totalorder %s612_s20, 2  ;;  %s364_s26 = sand.u32 1, %s592_s15  }
 0x119   : > { %s365_s29 = scalar_lea.sflag [#allocation3], %s364_s26 }
 0x11a   : > { %p478_p7 = pnand %p481_p6, %p689_p8 }
 0x11c   : > { %p479_p9 = pneg %p478_p7 }
 0x11e   : > { %587 = dma.done.wait (%p479_p9), %s365_s29, 256  }
 0x11f   : > { %589 = vsyncadd (%p479_p9), %s365_s29, 4294967040  ;;  %s18_s20 = sadd.s32 1, %s612_s20   ;;  %s759_s15 = smov %s596_s16 }
 0x120   : > { %p15_p10 = scmp.ge.s32.totalorder %s18_s20, 4   ;;  %s760_s16 = smov %s600_s17 }
 0x121   : > { %s761_s17 = smov %s695_s28  ;;  %s762_s18 = smov %s608_s19 }
 0x122   : > { %s763_s19 = smov %s765_s23  ;;  %17 = sbr.rel (!%p15_p10) target bundleno = 4 (0x4), region = 79 }
 0x127   :  { %371 = vsyncpa [#allocation3], 1 }
 0x128   :  { %373 = vsyncpa [#allocation3 + $0x1], 1 }

</bundles_post_ra>
